<compile_context>
chip_gen: v5e
topology: v5e:2x2
jax: 0.10.0
libtpu: 0.0.40
codegen_flags: <defaults>
</compile_context>

<pallas_src>
import functools

import jax
import jax.numpy as jnp
from jax.experimental import pallas as pl
from jax.experimental.pallas import tpu as pltpu

_VMEM_LIMIT = 32 * 1024 * 1024   # generous for the <10 MiB working set, safe
                                 # on v5e/v6e (128 MiB) and v7x (64 MiB)
_SAMPLE_LANES = 32               # per-sample lane frame (CIFAR width)
_N_CLASSES = 10


def _round_up(x, m):
    return (x + m - 1) // m * m


# ---------------------------------------------------------------------------
# pltpu.roll direction probe (cached; run once OUTSIDE jit in prepare_params).
# ---------------------------------------------------------------------------
_ROLL_MATCHES_NUMPY = None


def _roll_matches_numpy():
    """True iff pltpu.roll(x, s, axis) == np.roll(x, s, axis), i.e. out[i]=x[i-s]."""
    global _ROLL_MATCHES_NUMPY
    if _ROLL_MATCHES_NUMPY is None:
        def probe(x_ref, o_ref):
            o_ref[...] = pltpu.roll(x_ref[...], shift=1, axis=1)

        x = jnp.tile(jnp.arange(128, dtype=jnp.float32)[None, :], (8, 1))
        out = pl.pallas_call(
            probe, out_shape=jax.ShapeDtypeStruct((8, 128), jnp.float32))(x)
        _ROLL_MATCHES_NUMPY = bool(out[0, 0] == 127.0)
    return _ROLL_MATCHES_NUMPY


# ---------------------------------------------------------------------------
# Fused conv(5x5, VALID) + bias + ReLU + 2x2/2 max-pool kernel (batched).
# ---------------------------------------------------------------------------
def _conv_relu_pool_kernel(x_ref, ae_ref, ao_ref, b_ref, o_ref, acc_e, acc_o,
                           *, col_stride, numpy_roll):
    """One batch block.

    x_ref : (Cin*H, B*32) activations; per-sample data sits at lane stride
            `col_stride` inside each 32-lane frame.
    ae/ao : (K, Cout*Hp, Cin*H) banded conv weights with the pool's even/odd
            output-row selection folded in (bf16, f32 accumulation).
    o_ref : (Cout*Hp, B*32) pooled output; data at lane stride 2*col_stride.
    """
    k = ae_ref.shape[0]
    lanes = x_ref.shape[1]
    xb = x_ref[...].astype(ae_ref.dtype)

    def shift_left(v, d):
        # out[:, c] = v[:, c + d].  Wrapped lanes only reach per-sample
        # columns that valid outputs never read (checked for this geometry).
        if d == 0:
            return v
        s = (lanes - d) if numpy_roll else d
        return pltpu.roll(v, shift=s, axis=1)

    for dj in range(k):                                    # static, unrolled
        xs = shift_left(xb, dj * col_stride)
        pe = jnp.dot(ae_ref[dj], xs, preferred_element_type=jnp.float32)
        po = jnp.dot(ao_ref[dj], xs, preferred_element_type=jnp.float32)
        if dj == 0:
            acc_e[...] = pe
            acc_o[...] = po
        else:
            acc_e[...] += pe
            acc_o[...] += po

    rmax = jnp.maximum(acc_e[...], acc_o[...])             # pool over rows
    cmax = jnp.maximum(rmax, shift_left(rmax, col_stride))  # pool over cols
    # bias is constant within a 2x2 window and ReLU is monotone, so
    # relu(pool(conv) + b) == pool(relu(conv + b)).
    o_ref[...] = jnp.maximum(cmax + b_ref[...], 0.0).astype(o_ref.dtype)


def conv_relu_pool(x, cp, *, batch_block, col_stride):
    """x: (Cin*H, Npad*32) lane-folded -> (Cout*Hp, Npad*32) pooled output."""
    ch, total_lanes = x.shape
    k, r, _ = cp["a_even"].shape
    lanes = batch_block * _SAMPLE_LANES
    assert total_lanes % lanes == 0
    kernel = functools.partial(
        _conv_relu_pool_kernel, col_stride=col_stride,
        numpy_roll=_roll_matches_numpy())
    return pl.pallas_call(
        kernel,
        grid=(total_lanes // lanes,),
        in_specs=[
            pl.BlockSpec((ch, lanes), lambda i: (0, i)),     # batch block of x
            pl.BlockSpec((k, r, ch), lambda i: (0, 0, 0)),   # A_even (resident)
            pl.BlockSpec((k, r, ch), lambda i: (0, 0, 0)),   # A_odd  (resident)
            pl.BlockSpec((r, 1), lambda i: (0, 0)),          # bias column
        ],
        out_specs=pl.BlockSpec((r, lanes), lambda i: (0, i)),
        out_shape=jax.ShapeDtypeStruct((r, total_lanes), jnp.float32),
        scratch_shapes=[pltpu.VMEM((r, lanes), jnp.float32),
                        pltpu.VMEM((r, lanes), jnp.float32)],
        compiler_params=pltpu.CompilerParams(
            dimension_semantics=("parallel",),
            vmem_limit_bytes=_VMEM_LIMIT),
    )(x, cp["a_even"], cp["a_odd"], cp["bias2d"])


# ---------------------------------------------------------------------------
# Fused fc1 -> relu -> fc2 -> relu -> fc3 kernel (weights resident in VMEM,
# hidden dims zero-padded to 128 lanes).
# ---------------------------------------------------------------------------
def _fc_stack_kernel(x_ref, w1_ref, b1_ref, w2_ref, b2_ref, w3_ref, b3_ref,
                     o_ref):
    dt = w1_ref.dtype
    x = x_ref[...].astype(dt)
    h = jnp.dot(x, w1_ref[...], preferred_element_type=jnp.float32) + b1_ref[...]
    h = jnp.maximum(h, 0.0).astype(dt)
    h = jnp.dot(h, w2_ref[...], preferred_element_type=jnp.float32) + b2_ref[...]
    h = jnp.maximum(h, 0.0).astype(dt)
    o = jnp.dot(h, w3_ref[...], preferred_element_type=jnp.float32) + b3_ref[...]
    o_ref[...] = o.astype(o_ref.dtype)


def fc_stack(x, fp):
    """x: (N, 400) -> (N, 128) logits (columns >= 10 are zero padding)."""
    m, k_in = x.shape
    block_m = min(1024, _round_up(m, 8))
    m_pad = _round_up(m, block_m)
    if m_pad != m:
        x = jnp.pad(x, ((0, m_pad - m), (0, 0)))
    n_out = fp["w3"].shape[1]
    weight_specs = [pl.BlockSpec(fp[name].shape, lambda i: (0, 0))
                    for name in ("w1", "b1", "w2", "b2", "w3", "b3")]
    out = pl.pallas_call(
        _fc_stack_kernel,
        grid=(m_pad // block_m,),
        in_specs=[pl.BlockSpec((block_m, k_in), lambda i: (i, 0))] + weight_specs,
        out_specs=pl.BlockSpec((block_m, n_out), lambda i: (i, 0)),
        out_shape=jax.ShapeDtypeStruct((m_pad, n_out), jnp.float32),
        compiler_params=pltpu.CompilerParams(
            dimension_semantics=("parallel",),
            vmem_limit_bytes=_VMEM_LIMIT),
    )(x, fp["w1"], fp["b1"], fp["w2"], fp["b2"], fp["w3"], fp["b3"])
    return out[:m]


# ---------------------------------------------------------------------------
# One-time host-side parameter preparation.
# ---------------------------------------------------------------------------
def _prepare_conv(w, b, h_in, weight_dtype):
    """Banded weight matrices for one conv+pool layer.

    A_dj[co*Ho + ho, ci*H + h] = w[co, ci, h - ho, dj]  (0 <= h - ho < K, else 0)
    so conv(x)[co, ho, :] = sum_dj A_dj @ (x2d lane-shifted left by dj).
    The pool's even/odd output-row selection is folded into A.
    """
    cout, cin, k, _ = w.shape
    ho_dim = h_in - k + 1
    hp = ho_dim // 2

    ho = jnp.arange(ho_dim)[:, None]
    h = jnp.arange(h_in)[None, :]
    di = h - ho                                         # (Ho, H)
    valid = (di >= 0) & (di < k)
    di_c = jnp.clip(di, 0, k - 1)
    wt = jnp.transpose(w, (2, 3, 0, 1))                 # (K_di, K_dj, Cout, Cin)
    g = wt[di_c]                                        # (Ho, H, K_dj, Cout, Cin)
    g = jnp.where(valid[:, :, None, None, None], g, 0.0)
    a = jnp.transpose(g, (2, 3, 0, 4, 1)).reshape(k, cout * ho_dim, cin * h_in)

    even_rows = (jnp.arange(cout)[:, None] * ho_dim
                 + 2 * jnp.arange(hp)[None, :]).reshape(-1)
    return {
        "a_even": a[:, even_rows, :].astype(weight_dtype),
        "a_odd": a[:, even_rows + 1, :].astype(weight_dtype),
        "bias2d": jnp.repeat(b, hp)[:, None].astype(jnp.float32),
    }


def _prepare_fc(params, weight_dtype):
    def pad2(a, rows, cols):
        return jnp.pad(a, ((0, rows - a.shape[0]), (0, cols - a.shape[1])))

    def pad1(a, cols):
        return jnp.pad(a, (0, cols - a.shape[0])).reshape(1, -1)

    return {  # stored as (in, out), zero-padded to 128-lane hidden dims
        "w1": pad2(params["fc1_w"].T, 400, 128).astype(weight_dtype),
        "b1": pad1(params["fc1_b"], 128).astype(jnp.float32),
        "w2": pad2(params["fc2_w"].T, 128, 128).astype(weight_dtype),
        "b2": pad1(params["fc2_b"], 128).astype(jnp.float32),
        "w3": pad2(params["fc3_w"].T, 128, 128).astype(weight_dtype),
        "b3": pad1(params["fc3_b"], 128).astype(jnp.float32),
    }


def init_params(key):
    def uni(k, shape, fan_in):
        bound = 1.0 / jnp.sqrt(jnp.float32(fan_in))
        return jax.random.uniform(k, shape, jnp.float32, -bound, bound)

    ks = jax.random.split(key, 10)
    return {
        "conv1_w": uni(ks[0], (6, 3, 5, 5), 3 * 25),
        "conv1_b": uni(ks[1], (6,), 3 * 25),
        "conv2_w": uni(ks[2], (16, 6, 5, 5), 6 * 25),
        "conv2_b": uni(ks[3], (16,), 6 * 25),
        "fc1_w": uni(ks[4], (120, 400), 400),
        "fc1_b": uni(ks[5], (120,), 400),
        "fc2_w": uni(ks[6], (84, 120), 120),
        "fc2_b": uni(ks[7], (84,), 120),
        "fc3_w": uni(ks[8], (10, 84), 84),
        "fc3_b": uni(ks[9], (10,), 84),
    }


def prepare_params(params, weight_dtype=jnp.bfloat16):
    """One-time host-side preparation (fixed 3x32x32 CIFAR geometry).

    weight_dtype=jnp.bfloat16 gives native MXU throughput (f32 accumulation);
    pass jnp.float32 for closer numerical parity with an f32 reference.
    """
    _roll_matches_numpy()      # run the roll-direction probe outside jit
    c1 = _prepare_conv(params["conv1_w"], params["conv1_b"], 32, weight_dtype)
    c2 = _prepare_conv(params["conv2_w"], params["conv2_b"], 14, weight_dtype)
    return {"conv1": c1, "conv2": c2, "fc": _prepare_fc(params, weight_dtype)}


def _conv_grid_dims(n):
    # Batch blocks are multiples of 4 samples so block lanes (B*32) are
    # multiples of 128; capped at 64 samples (2048 lanes) so the working set
    # stays small even on v7x's 64 MiB VMEM; prefer >=2 grid steps so both
    # v7x TensorCores get work.
    b = min(64, _round_up(max(n, 1), 4))
    n_pad = _round_up(n, b)
    if n_pad // b == 1 and b >= 8:
        b = _round_up(b // 2, 4)
        n_pad = _round_up(n, b)
    return b, n_pad


# ---------------------------------------------------------------------------
# Forward pass (mirrors MaskedCifar.forward).
# ---------------------------------------------------------------------------
@jax.jit
def masked_cifar_forward(prepared, x):
    """x: (N, 3, 32, 32) float32 NCHW -> logits (N, 10)."""
    n, cin, h, w = x.shape
    assert (cin, h, w) == (3, 32, 32), "MaskedCifar is fixed to 3x32x32 inputs"
    b, n_pad = _conv_grid_dims(n)
    if n_pad != n:
        x = jnp.pad(x, ((0, n_pad - n), (0, 0), (0, 0), (0, 0)))
    # Lane-folded layout: rows = ci*32 + h, lanes = sample*32 + w.
    x2d = jnp.transpose(x, (1, 2, 0, 3)).reshape(cin * h, n_pad * w)
    y1 = conv_relu_pool(x2d, prepared["conv1"], batch_block=b, col_stride=1)
    #   y1: (6*14, n_pad*32), per-sample data at lanes 2*w2 (w2 < 14)
    y2 = conv_relu_pool(y1, prepared["conv2"], batch_block=b, col_stride=2)
    #   y2: (16*5, n_pad*32), per-sample data at lanes 4*wp (wp < 5)
    z = y2.reshape(16, 5, n_pad, _SAMPLE_LANES)[:, :, :n, 0:20:4]  # (16,5,N,5)
    flat = jnp.transpose(z, (2, 0, 1, 3)).reshape(n, 400)  # == torch view(-1, 400)
    return fc_stack(flat, prepared["fc"])[:, :_N_CLASSES]


# ---------------------------------------------------------------------------
# Pure-JAX reference (for the in-script self-check).
# ---------------------------------------------------------------------------
def _reference_forward(params, x):
    def conv(v, w, b):
        y = jax.lax.conv_general_dilated(
            v, w, window_strides=(1, 1), padding="VALID",
            dimension_numbers=("NCHW", "OIHW", "NCHW"))
        return y + b[None, :, None, None]

    def pool2x2(v):
        return jax.lax.reduce_window(
            v, -jnp.inf, jax.lax.max, (1, 1, 2, 2), (1, 1, 2, 2), "VALID")

    h = pool2x2(jax.nn.relu(conv(x, params["conv1_w"], params["conv1_b"])))
    h = pool2x2(jax.nn.relu(conv(h, params["conv2_w"], params["conv2_b"])))
    h = h.reshape(h.shape[0], -1)
    h = jax.nn.relu(h @ params["fc1_w"].T + params["fc1_b"])
    h = jax.nn.relu(h @ params["fc2_w"].T + params["fc2_b"])
    return h @ params["fc3_w"].T + params["fc3_b"]


if __name__ == "__main__":
    key = jax.random.PRNGKey(0)
    pkey, xkey = jax.random.split(key)
    params = init_params(pkey)
    prepared = prepare_params(params)

    x = jax.random.normal(xkey, (2, 3, 32, 32), jnp.float32)
    out = jax.block_until_ready(masked_cifar_forward(prepared, x))
    assert out.shape == (2, _N_CLASSES) and out.dtype == jnp.float32

    ref = _reference_forward(params, x)
    err = float(jnp.max(jnp.abs(out - ref)))
    scale = float(jnp.max(jnp.abs(ref)))
    tol = 1e-2 + 5e-2 * scale   # loose: bf16 weights/activations on the MXU
    assert err <= tol, f"mismatch vs reference: max|diff|={err:.5f} tol={tol:.5f}"
    print("KERNEL_OK")
</pallas_src>

<mosaic_0001>
module attributes {stable_mosaic.version = 11 : i64} {
  func.func @probe(%arg0: memref<8x128xf32, #tpu.memory_space<vmem>>, %arg1: memref<8x128xf32, #tpu.memory_space<vmem>>) attributes {dimension_semantics = [], scalar_prefetch = 0 : i64, scratch_operands = 0 : i64, tpu.core_type = #tpu.core_type<tc>} {
    %c0 = arith.constant 0 : index
    %c0_0 = arith.constant 0 : index
    %0 = vector.load %arg0[%c0, %c0_0] : memref<8x128xf32, #tpu.memory_space<vmem>>, vector<8x128xf32>
    %c1_i32 = arith.constant 1 : i32
    %1 = tpu.dynamic_rotate %0 by %c1_i32 dim 1 : vector<8x128xf32>, i32 -> vector<8x128xf32>
    %c0_1 = arith.constant 0 : index
    %c0_2 = arith.constant 0 : index
    %2 = vector.load %arg1[%c0_1, %c0_2] : memref<8x128xf32, #tpu.memory_space<vmem>>, vector<8x128xf32>
    tpu.vector_store %arg1[%c0_1, %c0_2], %1 {strides = array<i32>} : memref<8x128xf32, #tpu.memory_space<vmem>>, vector<8x128xf32>,
    return
  }
}

</mosaic_0001>

<bundles_post_ra>
// kernel: tpu_custom_call.1
= control target key start
LH: loop header
LB: loop body
LE: loop exit
PB: predicated region body
PF: predicated region fallthrough
CT: control target
= control target key end

     0   :  { %6 = vsyncpa [#allocation3], 0  ;;  %s118_s0 = inlined_call_operand.hbm [shape: f32[8,128], index: 0, kind: input, shape index: {}]   ;;  %s119_s1 = inlined_call_operand.hbm [shape: f32[8,128], index: 1, kind: output, shape index: {}]  }
   0x1   :  { %7 = vsyncpa [#allocation4], 0  ;;  %s13_s8 = sshll.u32 %s118_s0, 4  ;;  %s99_s9 = smov [#allocation2]   ;;  %s14_s8 = int_to_ptr.hbm [resolvable:$true] %s13_s8 }
   0x2   :  { %s15_s10 = sshll.u32 %s99_s9, 4  ;;  %s16_s10 = int_to_ptr.vmem [resolvable:$true] %s15_s10 }
   0x3   :  { %18 = dma.hbm_to_vmem [thread:$0]  %s14_s8, 128, %s16_s10, [#allocation3]  }
   0x4   :  { %95 = dma.done.wait [#allocation3], 128  }
   0x5   :  { %96 = vsyncadd [#allocation3], 4294967168  ;;  %v23_v0 = vld [vmem:[#allocation2] sm:$0xff]  ;;  %s100_s11 = smov 1   ;;  %s101_s12 = smov [#allocation5]  }
   0x6   :  { %24 = vrot.lane.b32.xlu0 %v23_v0, %s100_s11  ;;  %s32_s13 = sshll.u32 %s101_s12, 4  ;;  %s34_s16 = sshll.u32 %s119_s1, 4  ;;  %s33_s13 = int_to_ptr.vmem [resolvable:$true] %s32_s13  ;;  %s35_s16 = int_to_ptr.hbm [resolvable:$true] %s34_s16 }
  0x78   :  { %v25_v1 = vpop.permute.xlu0 %24 }
  0x79   :  { %26 = vst [vmem:[#allocation5] sm:$0xff] %v25_v1 }
  0x7a   :  { %37 = dma.vmem_to_hbm [thread:$0]  %s33_s13, 128, %s35_s16, [#allocation4]  }
  0x7b   :  { %97 = dma.done.wait [#allocation4], 128  }
  0x7c   :  { %98 = vsyncadd [#allocation4], 4294967168 }
  0x7d   :  { %42 = vsyncpa [#allocation3], 1 }
  0x7e   :  { %43 = vsyncpa [#allocation4], 1 }

</bundles_post_ra>
